<compile_context>
chip_gen: v6e
topology: v6e:2x2x1
jax: 0.10.0
libtpu: 0.0.40
codegen_flags: <defaults>
</compile_context>

<pallas_src>
import jax
import jax.numpy as jnp
from jax.experimental import pallas as pl
from jax.experimental.pallas import tpu as pltpu


def _correlation_kernel(stacks_ref, out_ref):
    """stacks_ref: VMEM (3, 2, N) f32; out_ref: SMEM (3,) int32 (values 1 or 2)."""
    n = stacks_ref.shape[2]
    inv_n = 1.0 / float(n)
    for idx in range(3):                      # static unroll over the 3 tiny stacks
        rows = stacks_ref[idx]                # (2, N) f32
        mean = jnp.sum(rows, axis=1, keepdims=True) * inv_n
        m = rows - mean                       # centered rows
        m0 = m[0:1, :]
        m1 = m[1:2, :]
        s01 = jnp.sum(m0 * m1)                # cov[0,1] * (N-1)
        s00 = jnp.sum(m0 * m0)                # cov[0,0] * (N-1)
        s11 = jnp.sum(m1 * m1)                # cov[1,1] * (N-1)
        corr = s01 / jnp.sqrt(s00 * s11)      # (N-1) factors cancel exactly
        out_ref[idx] = jnp.where(jnp.abs(corr) < 0.001,
                                 jnp.int32(1), jnp.int32(2))


def uniform_no_correlation_forward(x, key):
    """Returns (r_ab, r_major, r_minor), each a scalar int32 in {1, 2}."""
    assert x.ndim == 1
    n = int(x.shape[0])
    k_a, k_b, k_larger = jax.random.split(key, 3)
    # TODO(synk): the module annotates float64; TPU has no native f64, so the
    # uniforms and the correlation statistics are computed in float32.
    a = jax.random.uniform(k_a, (n,), dtype=jnp.float32)
    b = jax.random.uniform(k_b, (n,), dtype=jnp.float32)
    larger = jax.random.uniform(k_larger, (2, n), dtype=jnp.float32)

    stack_ab = jnp.stack([a, b])                           # (2, n)
    stack_major = larger                                   # (2, n)
    stack_minor = jnp.transpose(larger).reshape(2, n)      # larger.t().reshape(2, -1)
    stacks = jnp.stack([stack_ab, stack_major, stack_minor])  # (3, 2, n)

    out = pl.pallas_call(
        _correlation_kernel,
        in_specs=[pl.BlockSpec(memory_space=pltpu.MemorySpace.VMEM)],
        out_specs=pl.BlockSpec(memory_space=pltpu.MemorySpace.SMEM),
        out_shape=jax.ShapeDtypeStruct((3,), jnp.int32),
    )(stacks)
    # TODO(synk): torch.where(..., 1, 2) yields int64 scalars; returned as int32
    # here (JAX x64 is disabled by default and TPU has no native i64 path).
    return out[0], out[1], out[2]


if __name__ == "__main__":
    key = jax.random.PRNGKey(0)
    k_x, k_fwd = jax.random.split(key)
    # Shape from the module annotation: x is float64[1000] (values unused).
    x = jax.random.uniform(k_x, (1000,), dtype=jnp.float32)

    res = uniform_no_correlation_forward(x, k_fwd)
    jax.block_until_ready(res)
    r_ab, r_major, r_minor = res
    assert r_ab.shape == () and r_major.shape == () and r_minor.shape == ()
    for r in (r_ab, r_major, r_minor):
        assert int(r) in (1, 2)
    print("KERNEL_OK")
</pallas_src>

<mosaic_0001>
module attributes {stable_mosaic.version = 11 : i64} {
  func.func @_correlation_kernel(%arg0: memref<3x2x1000xf32, #tpu.memory_space<vmem>>, %arg1: memref<3xi32, #tpu.memory_space<smem>>) attributes {dimension_semantics = [], scalar_prefetch = 0 : i64, scratch_operands = 0 : i64, tpu.core_type = #tpu.core_type<tc>} {
    %c0 = arith.constant 0 : index
    %c0_0 = arith.constant 0 : index
    %c0_1 = arith.constant 0 : index
    %0 = vector.load %arg0[%c0, %c0_0, %c0_1] : memref<3x2x1000xf32, #tpu.memory_space<vmem>>, vector<1x2x1000xf32>
    %1 = vector.shape_cast %0 : vector<1x2x1000xf32> to vector<2x1000xf32>
    %cst = arith.constant dense<0.000000e+00> : vector<2xf32>
    %2 = vector.multi_reduction <add>, %1, %cst [1] : vector<2x1000xf32> to vector<2xf32>
    %3 = vector.shape_cast %2 : vector<2xf32> to vector<2x1xf32>
    %cst_2 = arith.constant 1.000000e-03 : f32
    %4 = vector.broadcast %cst_2 : f32 to vector<2x1xf32>
    %5 = arith.mulf %3, %4 : vector<2x1xf32>
    %6 = vector.broadcast %5 : vector<2x1xf32> to vector<2x1000xf32>
    %7 = arith.subf %1, %6 : vector<2x1000xf32>
    %8 = vector.extract_strided_slice %7 {offsets = [0, 0], sizes = [1, 1000], strides = [1, 1]} : vector<2x1000xf32> to vector<1x1000xf32>
    %9 = vector.extract_strided_slice %7 {offsets = [1, 0], sizes = [1, 1000], strides = [1, 1]} : vector<2x1000xf32> to vector<1x1000xf32>
    %10 = arith.mulf %8, %9 : vector<1x1000xf32>
    %11 = vector.shape_cast %10 : vector<1x1000xf32> to vector<1x1x1000xf32>
    %cst_3 = arith.constant dense<0.000000e+00> : vector<1xf32>
    %12 = vector.multi_reduction <add>, %11, %cst_3 [1, 2] : vector<1x1x1000xf32> to vector<1xf32>
    %13 = vector.shape_cast %12 : vector<1xf32> to vector<1x1x1xf32>
    %14 = vector.extract %13[0, 0, 0] : f32 from vector<1x1x1xf32>
    %15 = arith.mulf %8, %8 : vector<1x1000xf32>
    %16 = vector.shape_cast %15 : vector<1x1000xf32> to vector<1x1x1000xf32>
    %cst_4 = arith.constant dense<0.000000e+00> : vector<1xf32>
    %17 = vector.multi_reduction <add>, %16, %cst_4 [1, 2] : vector<1x1x1000xf32> to vector<1xf32>
    %18 = vector.shape_cast %17 : vector<1xf32> to vector<1x1x1xf32>
    %19 = vector.extract %18[0, 0, 0] : f32 from vector<1x1x1xf32>
    %20 = arith.mulf %9, %9 : vector<1x1000xf32>
    %21 = vector.shape_cast %20 : vector<1x1000xf32> to vector<1x1x1000xf32>
    %cst_5 = arith.constant dense<0.000000e+00> : vector<1xf32>
    %22 = vector.multi_reduction <add>, %21, %cst_5 [1, 2] : vector<1x1x1000xf32> to vector<1xf32>
    %23 = vector.shape_cast %22 : vector<1xf32> to vector<1x1x1xf32>
    %24 = vector.extract %23[0, 0, 0] : f32 from vector<1x1x1xf32>
    %25 = arith.mulf %19, %24 : f32
    %26 = math.sqrt %25 : f32
    %27 = arith.divf %14, %26 : f32
    %28 = math.absf %27 : f32
    %cst_6 = arith.constant 1.000000e-03 : f32
    %29 = arith.cmpf olt, %28, %cst_6 : f32
    %c1_i32 = arith.constant 1 : i32
    %c2_i32 = arith.constant 2 : i32
    %30 = arith.select %29, %c1_i32, %c2_i32 : i32
    %c0_7 = arith.constant 0 : index
    %31 = memref.load %arg1[%c0_7] : memref<3xi32, #tpu.memory_space<smem>>
    memref.store %30, %arg1[%c0_7] : memref<3xi32, #tpu.memory_space<smem>>
    %c1 = arith.constant 1 : index
    %c0_8 = arith.constant 0 : index
    %c0_9 = arith.constant 0 : index
    %32 = vector.load %arg0[%c1, %c0_8, %c0_9] : memref<3x2x1000xf32, #tpu.memory_space<vmem>>, vector<1x2x1000xf32>
    %33 = vector.shape_cast %32 : vector<1x2x1000xf32> to vector<2x1000xf32>
    %cst_10 = arith.constant dense<0.000000e+00> : vector<2xf32>
    %34 = vector.multi_reduction <add>, %33, %cst_10 [1] : vector<2x1000xf32> to vector<2xf32>
    %35 = vector.shape_cast %34 : vector<2xf32> to vector<2x1xf32>
    %cst_11 = arith.constant 1.000000e-03 : f32
    %36 = vector.broadcast %cst_11 : f32 to vector<2x1xf32>
    %37 = arith.mulf %35, %36 : vector<2x1xf32>
    %38 = vector.broadcast %37 : vector<2x1xf32> to vector<2x1000xf32>
    %39 = arith.subf %33, %38 : vector<2x1000xf32>
    %40 = vector.extract_strided_slice %39 {offsets = [0, 0], sizes = [1, 1000], strides = [1, 1]} : vector<2x1000xf32> to vector<1x1000xf32>
    %41 = vector.extract_strided_slice %39 {offsets = [1, 0], sizes = [1, 1000], strides = [1, 1]} : vector<2x1000xf32> to vector<1x1000xf32>
    %42 = arith.mulf %40, %41 : vector<1x1000xf32>
    %43 = vector.shape_cast %42 : vector<1x1000xf32> to vector<1x1x1000xf32>
    %cst_12 = arith.constant dense<0.000000e+00> : vector<1xf32>
    %44 = vector.multi_reduction <add>, %43, %cst_12 [1, 2] : vector<1x1x1000xf32> to vector<1xf32>
    %45 = vector.shape_cast %44 : vector<1xf32> to vector<1x1x1xf32>
    %46 = vector.extract %45[0, 0, 0] : f32 from vector<1x1x1xf32>
    %47 = arith.mulf %40, %40 : vector<1x1000xf32>
    %48 = vector.shape_cast %47 : vector<1x1000xf32> to vector<1x1x1000xf32>
    %cst_13 = arith.constant dense<0.000000e+00> : vector<1xf32>
    %49 = vector.multi_reduction <add>, %48, %cst_13 [1, 2] : vector<1x1x1000xf32> to vector<1xf32>
    %50 = vector.shape_cast %49 : vector<1xf32> to vector<1x1x1xf32>
    %51 = vector.extract %50[0, 0, 0] : f32 from vector<1x1x1xf32>
    %52 = arith.mulf %41, %41 : vector<1x1000xf32>
    %53 = vector.shape_cast %52 : vector<1x1000xf32> to vector<1x1x1000xf32>
    %cst_14 = arith.constant dense<0.000000e+00> : vector<1xf32>
    %54 = vector.multi_reduction <add>, %53, %cst_14 [1, 2] : vector<1x1x1000xf32> to vector<1xf32>
    %55 = vector.shape_cast %54 : vector<1xf32> to vector<1x1x1xf32>
    %56 = vector.extract %55[0, 0, 0] : f32 from vector<1x1x1xf32>
    %57 = arith.mulf %51, %56 : f32
    %58 = math.sqrt %57 : f32
    %59 = arith.divf %46, %58 : f32
    %60 = math.absf %59 : f32
    %cst_15 = arith.constant 1.000000e-03 : f32
    %61 = arith.cmpf olt, %60, %cst_15 : f32
    %c1_i32_16 = arith.constant 1 : i32
    %c2_i32_17 = arith.constant 2 : i32
    %62 = arith.select %61, %c1_i32_16, %c2_i32_17 : i32
    %c1_18 = arith.constant 1 : index
    %63 = memref.load %arg1[%c1_18] : memref<3xi32, #tpu.memory_space<smem>>
    memref.store %62, %arg1[%c1_18] : memref<3xi32, #tpu.memory_space<smem>>
    %c2 = arith.constant 2 : index
    %c0_19 = arith.constant 0 : index
    %c0_20 = arith.constant 0 : index
    %64 = vector.load %arg0[%c2, %c0_19, %c0_20] : memref<3x2x1000xf32, #tpu.memory_space<vmem>>, vector<1x2x1000xf32>
    %65 = vector.shape_cast %64 : vector<1x2x1000xf32> to vector<2x1000xf32>
    %cst_21 = arith.constant dense<0.000000e+00> : vector<2xf32>
    %66 = vector.multi_reduction <add>, %65, %cst_21 [1] : vector<2x1000xf32> to vector<2xf32>
    %67 = vector.shape_cast %66 : vector<2xf32> to vector<2x1xf32>
    %cst_22 = arith.constant 1.000000e-03 : f32
    %68 = vector.broadcast %cst_22 : f32 to vector<2x1xf32>
    %69 = arith.mulf %67, %68 : vector<2x1xf32>
    %70 = vector.broadcast %69 : vector<2x1xf32> to vector<2x1000xf32>
    %71 = arith.subf %65, %70 : vector<2x1000xf32>
    %72 = vector.extract_strided_slice %71 {offsets = [0, 0], sizes = [1, 1000], strides = [1, 1]} : vector<2x1000xf32> to vector<1x1000xf32>
    %73 = vector.extract_strided_slice %71 {offsets = [1, 0], sizes = [1, 1000], strides = [1, 1]} : vector<2x1000xf32> to vector<1x1000xf32>
    %74 = arith.mulf %72, %73 : vector<1x1000xf32>
    %75 = vector.shape_cast %74 : vector<1x1000xf32> to vector<1x1x1000xf32>
    %cst_23 = arith.constant dense<0.000000e+00> : vector<1xf32>
    %76 = vector.multi_reduction <add>, %75, %cst_23 [1, 2] : vector<1x1x1000xf32> to vector<1xf32>
    %77 = vector.shape_cast %76 : vector<1xf32> to vector<1x1x1xf32>
    %78 = vector.extract %77[0, 0, 0] : f32 from vector<1x1x1xf32>
    %79 = arith.mulf %72, %72 : vector<1x1000xf32>
    %80 = vector.shape_cast %79 : vector<1x1000xf32> to vector<1x1x1000xf32>
    %cst_24 = arith.constant dense<0.000000e+00> : vector<1xf32>
    %81 = vector.multi_reduction <add>, %80, %cst_24 [1, 2] : vector<1x1x1000xf32> to vector<1xf32>
    %82 = vector.shape_cast %81 : vector<1xf32> to vector<1x1x1xf32>
    %83 = vector.extract %82[0, 0, 0] : f32 from vector<1x1x1xf32>
    %84 = arith.mulf %73, %73 : vector<1x1000xf32>
    %85 = vector.shape_cast %84 : vector<1x1000xf32> to vector<1x1x1000xf32>
    %cst_25 = arith.constant dense<0.000000e+00> : vector<1xf32>
    %86 = vector.multi_reduction <add>, %85, %cst_25 [1, 2] : vector<1x1x1000xf32> to vector<1xf32>
    %87 = vector.shape_cast %86 : vector<1xf32> to vector<1x1x1xf32>
    %88 = vector.extract %87[0, 0, 0] : f32 from vector<1x1x1xf32>
    %89 = arith.mulf %83, %88 : f32
    %90 = math.sqrt %89 : f32
    %91 = arith.divf %78, %90 : f32
    %92 = math.absf %91 : f32
    %cst_26 = arith.constant 1.000000e-03 : f32
    %93 = arith.cmpf olt, %92, %cst_26 : f32
    %c1_i32_27 = arith.constant 1 : i32
    %c2_i32_28 = arith.constant 2 : i32
    %94 = arith.select %93, %c1_i32_27, %c2_i32_28 : i32
    %c2_29 = arith.constant 2 : index
    %95 = memref.load %arg1[%c2_29] : memref<3xi32, #tpu.memory_space<smem>>
    memref.store %94, %arg1[%c2_29] : memref<3xi32, #tpu.memory_space<smem>>
    return
  }
}

</mosaic_0001>

<bundles_post_ra>
// kernel: tpu_custom_call.1
= control target key start
LH: loop header
LB: loop body
LE: loop exit
PB: predicated region body
PF: predicated region fallthrough
CT: control target
= control target key end

     0   :  { %6 = vsyncpa [#allocation3], 0  ;;  %s1373_s0 = inlined_call_operand.hbm [shape: f32[3,2,1000], index: 0, kind: input, shape index: {}]   ;;  %s1374_s1 = inlined_call_operand.hbm [shape: s32[3], index: 1, kind: output, shape index: {}]  }
   0x1   :  { %7 = vsyncpa [#allocation4], 0  ;;  %s1041_s6 = smov [#allocation2]  }
   0x2   :  { %s13_s7 = sshll.u32 %s1041_s6, 4  ;;  %s14_s7 = int_to_ptr.vmem [resolvable:$true] %s13_s7 }
   0x3   :  { %s1017_s8 = scalar_lea.vmem %s14_s7, 768  ;;  %p1022_p1 = scmp.lt.s32.totalorder %s14_s7, %s14_s7 }
   0x4   :  { %p1018_p0 = scmp.ne.s32.totalorder %s14_s7, %s1017_s8  ;;  %p1023_p2 = scmp.lt.s32.totalorder %s1017_s8, %s1017_s8 }
   0x6   :  { %p1024_p3 = por %p1023_p2, %p1022_p1 }
   0x8   :  { %p1025_p4 = pnand %p1024_p3, %p1018_p0 }
   0xa   :  { %1028 = shalt.err (!%p1025_p4)
}
   0xb   :  { %s1042_s9 = smov 256   ;;  %s1043_s10 = smov 16  }
   0xc   :  { %19 = dma.hbm_to_vmem [thread:$0]  %s1373_s0, 768, %s14_s7, [#allocation3], %s1042_s9, %s1042_s9, %s1043_s10  }
   0xd   :  { %1037 = dma.done.wait [#allocation3], 768  }
   0xe   :  { %1038 = vsyncadd [#allocation3], 4294966528  ;;  %v31_v0 = vlaneseq  ;;  %v1044_v1 = vmov 1983009808   ;;  %v23_v6 = vld [vmem:[#allocation2] sm:$0xff]  ;;  %v24_v7 = vld [vmem:[#allocation2 + $0x8] sm:$0xff] }
   0xf   :  { %v29_v2 = vunpack.c.l.s4 %v1044_v1  ;;  %v27_v8 = vcombine.high %v23_v6, %v23_v6  ;;  %vm69_vm0 = vcmask 1041408   ;;  %v44_v12 = vcombine.high %v24_v7, %v24_v7  ;;  %v1077_v33 = vld [vmem:[#allocation2 + $0x10] sm:$0xff]  ;;  %v1087_v46 = vld [vmem:[#allocation2 + $0x18] sm:$0xff]  ;;  %s1046_s10 = smov [#allocation5]  }
  0x10   :  { %v1060_v3 = vshrl.u32 %v31_v0, 7  ;;  %vm83_vm1 = vcmask 844800   ;;  %v334_v35 = vcombine.high %v1077_v33, %v1077_v33  ;;  %v1045_v37 = vmov 269488144  }
  0x11   :  { %v30_v4 = vunpack.c.0.s8 %v29_v2  ;;  %v91_v38 = vunpack.c.l.s4 %v1045_v37  ;;  %v351_v1 = vcombine.high %v1087_v46, %v1087_v46  ;;  %vm152_vm2 = vcmask 1040384  }
  0x12   :  { %v1097_v54 = vsub.s32 0, %v1060_v3  ;;  %v1100_v58 = vsub.s32 2, %v1060_v3  ;;  %v1104_v60 = vsub.s32 4, %v1060_v3  ;;  %v1109_v0 = vsub.s32 6, %v1060_v3 }
  0x13   :  { %v1063_v5 = vsub.s32 %v30_v4, %v1060_v3  ;;  %v92_v42 = vunpack.c.0.s8 %v91_v38  ;;  %vm166_vm3 = vcmask 843776  }
  0x15   :  { %v34_v9 = vrot.slane %v23_v6, %v1063_v5  ;;  %v41_v10 = vrot.slane %v27_v8, %v1063_v5  ;;  %v51_v13 = vrot.slane %v24_v7, %v1063_v5  ;;  %v58_v19 = vrot.slane %v44_v12, %v1063_v5 }
  0x16   :  { %v341_v34 = vrot.slane %v1077_v33, %v1063_v5  ;;  %v348_v39 = vrot.slane %v334_v35, %v1063_v5  ;;  %v1090_v47 = vsub.s32 %v92_v42, %v1060_v3  ;;  %v358_v51 = vrot.slane %v1087_v46, %v1063_v5 }
  0x17   :  { %v42_v11 = vcombine.high %v34_v9, %v34_v9  ;;  %v70_v14 = vsel %vm69_vm0, %v34_v9, 0.0  ;;  %v43_v15 = vcombine.high %v41_v10, %v41_v10  ;;  %v73_v17 = vsel %vm69_vm0, %v41_v10, 0.0 }
  0x18   :  { %v59_v20 = vcombine.high %v51_v13, %v51_v13  ;;  %v77_v23 = vsel %vm69_vm0, %v51_v13, 0.0  ;;  %v60_v25 = vcombine.high %v58_v19, %v58_v19  ;;  %v81_v28 = vsel %vm69_vm0, %v58_v19, 0.0 }
  0x19   :  { %v71_v16 = vsel %vm69_vm0, %v42_v11, 0.0  ;;  %v75_v21 = vsel %vm69_vm0, %v43_v15, 0.0  ;;  %v349_v36 = vcombine.high %v341_v34, %v341_v34  ;;  %v376_v40 = vsel %vm69_vm0, %v341_v34, 0.0 }
  0x1a   :  { %v72_v18 = vadd.f32 %v71_v16, %v70_v14  ;;  %v79_v26 = vsel %vm69_vm0, %v59_v20, 0.0  ;;  %v84_v30 = vsel %vm83_vm1, %v60_v25, 0.0  ;;  %v350_v44 = vcombine.high %v348_v39, %v348_v39 }
  0x1b   :  { %v377_v41 = vsel %vm69_vm0, %v349_v36, 0.0  ;;  %v379_v45 = vsel %vm69_vm0, %v348_v39, 0.0  ;;  %v383_v59 = vsel %vm69_vm0, %v358_v51, 0.0  ;;  %v366_v61 = vcombine.high %v358_v51, %v358_v51 }
  0x1c   :  { %v74_v22 = vadd.f32 %v73_v17, %v72_v18  ;;  %v378_v43 = vadd.f32 %v377_v41, %v376_v40  ;;  %v381_v52 = vsel %vm69_vm0, %v350_v44, 0.0  ;;  %v1122_v11 = vsub.s32 1, %v1060_v3 }
  0x1d   :  { %v385_v12 = vsel %vm69_vm0, %v366_v61, 0.0  ;;  %v1130_v16 = vrot.slane %v351_v1, %v1063_v5  ;;  %v1133_v18 = vsub.s32 3, %v1060_v3  ;;  %v1136_v19 = vsub.s32 5, %v1060_v3 }
  0x1e   :  { %v76_v24 = vadd.f32 %v75_v21, %v74_v22  ;;  %v380_v49 = vadd.f32 %v379_v45, %v378_v43  ;;  %v1139_v20 = vsub.s32 7, %v1060_v3 }
  0x1f   :  { %v387_v40 = vsel %vm69_vm0, %v1130_v16, 0.0 }
  0x20   :  { %v78_v27 = vadd.f32 %v77_v23, %v76_v24  ;;  %v382_v55 = vadd.f32 %v381_v52, %v380_v49 }
  0x22   :  { %v80_v29 = vadd.f32 %v79_v26, %v78_v27  ;;  %v384_v2 = vadd.f32 %v383_v59, %v382_v55 }
  0x24   :  { %v82_v31 = vadd.f32 %v81_v28, %v80_v29  ;;  %v386_v24 = vadd.f32 %v385_v12, %v384_v2 }
  0x26   :  { %v85_v32 = vadd.f32 %v84_v30, %v82_v31  ;;  %v367_v31 = vcombine.high %v1130_v16, %v1130_v16 }
  0x28   :  { %86 = vadd.xlane.f32.xlu0 %v85_v32 }
  0xb1   :  { %v87_v48 = vpop.xlane.xlu0 %86 }
  0xb2   :  { %v88_v50 = vmul.f32 0.001, %v87_v48 }
  0xb4   :  { %v96_v53 = vrot.slane %v88_v50, %v1090_v47 }
  0xb6   :  { %v98_v56 = vsub.f32 %v23_v6, %v96_v53  ;;  %v99_v57 = vsub.f32 %v24_v7, %v96_v53 }
  0xb8   :  { %v949_v62 = vrot.slane %v98_v56, 9  ;;  %v1106_v63 = vmul.f32 %v98_v56, %v98_v56  ;;  %v1113_v6 = vmul.f32 %v99_v57, %v99_v57  ;;  %v950_v9 = vrot.slane %v99_v57, 9 }
  0xba   :  { %v108_v4 = vmul.f32 %v949_v62, %v98_v56  ;;  %v185_v7 = vrot.slane %v1106_v63, %v1097_v54  ;;  %v189_v8 = vrot.slane %v1106_v63, %v1100_v58  ;;  %v193_v10 = vrot.slane %v1106_v63, %v1104_v60 }
  0xbb   :  { %v197_v13 = vrot.slane %v1106_v63, %v1109_v0  ;;  %v201_v21 = vrot.slane %v1113_v6, %v1097_v54  ;;  %v109_v25 = vmul.f32 %v950_v9, %v99_v57  ;;  %v205_v29 = vrot.slane %v1113_v6, %v1100_v58 }
  0xbc   :  { %v222_v14 = vsel %vm152_vm2, %v185_v7, 0.0  ;;  %v223_v15 = vsel %vm152_vm2, %v189_v8, 0.0  ;;  %v225_v22 = vsel %vm152_vm2, %v193_v10, 0.0  ;;  %v115_v23 = vrot.slane %v108_v4, %v1097_v54 }
  0xbd   :  { %v224_v17 = vadd.f32 %v223_v15, %v222_v14  ;;  %v119_v27 = vrot.slane %v108_v4, %v1100_v58  ;;  %v123_v28 = vrot.slane %v108_v4, %v1104_v60  ;;  %v209_v3 = vrot.slane %v1113_v6, %v1104_v60 }
  0xbe   :  { %v227_v30 = vsel %vm152_vm2, %v197_v13, 0.0  ;;  %v127_v34 = vrot.slane %v108_v4, %v1109_v0  ;;  %v153_v35 = vsel %vm152_vm2, %v115_v23, 0.0  ;;  %v213_v37 = vrot.slane %v1113_v6, %v1109_v0 }
  0xbf   :  { %v226_v26 = vadd.f32 %v225_v22, %v224_v17  ;;  %v154_v36 = vsel %vm152_vm2, %v119_v27, 0.0  ;;  %v229_v38 = vsel %vm152_vm2, %v201_v21, 0.0  ;;  %v131_v42 = vrot.slane %v109_v25, %v1097_v54 }
  0xc0   :  { %v155_v39 = vadd.f32 %v154_v36, %v153_v35  ;;  %v156_v43 = vsel %vm152_vm2, %v123_v28, 0.0  ;;  %v249_v44 = vrot.slane %v1106_v63, %v1122_v11  ;;  %v231_v45 = vsel %vm152_vm2, %v205_v29, 0.0 }
  0xc1   :  { %v228_v32 = vadd.f32 %v227_v30, %v226_v26  ;;  %v253_v49 = vrot.slane %v1106_v63, %v1133_v18  ;;  %v257_v50 = vrot.slane %v1106_v63, %v1136_v19  ;;  %v233_v52 = vsel %vm152_vm2, %v209_v3, 0.0 }
  0xc2   :  { %v157_v48 = vadd.f32 %v156_v43, %v155_v39  ;;  %v135_v53 = vrot.slane %v109_v25, %v1100_v58  ;;  %v158_v55 = vsel %vm152_vm2, %v127_v34, 0.0  ;;  %v261_v57 = vrot.slane %v1106_v63, %v1139_v20 }
  0xc3   :  { %v230_v41 = vadd.f32 %v229_v38, %v228_v32  ;;  %v286_v59 = vsel %vm152_vm2, %v249_v44, 0.0  ;;  %v287_v61 = vsel %vm152_vm2, %v253_v49, 0.0  ;;  %v139_v1 = vrot.slane %v109_v25, %v1104_v60 }
  0xc4   :  { %v159_v56 = vadd.f32 %v158_v55, %v157_v48  ;;  %v160_v2 = vsel %vm152_vm2, %v131_v42, 0.0  ;;  %v288_v4 = vadd.f32 %v287_v61, %v286_v59  ;;  %v235_v7 = vsel %vm166_vm3, %v213_v37, 0.0 }
  0xc5   :  { %v232_v51 = vadd.f32 %v231_v45, %v230_v41  ;;  %v265_v9 = vrot.slane %v1113_v6, %v1122_v11  ;;  %v289_v10 = vsel %vm152_vm2, %v257_v50, 0.0  ;;  %v143_v63 = vrot.slane %v109_v25, %v1109_v0 }
  0xc6   :  { %v161_v8 = vadd.f32 %v160_v2, %v159_v56  ;;  %v162_v13 = vsel %vm152_vm2, %v135_v53, 0.0  ;;  %v290_v14 = vadd.f32 %v289_v10, %v288_v4  ;;  %v269_v16 = vrot.slane %v1113_v6, %v1133_v18 }
  0xc7   :  { %v234_v62 = vadd.f32 %v233_v52, %v232_v51  ;;  %v291_v17 = vsel %vm152_vm2, %v261_v57, 0.0  ;;  %v164_v21 = vsel %vm152_vm2, %v139_v1, 0.0  ;;  %v273_v26 = vrot.slane %v1113_v6, %v1136_v19  ;;  %v1210_v57 = vld [vmem:[#allocation2 + $0x28] sm:$0xff] }
  0xc8   :  { %v163_v15 = vadd.f32 %v162_v13, %v161_v8  ;;  %v292_v22 = vadd.f32 %v291_v17, %v290_v14  ;;  %v293_v27 = vsel %vm152_vm2, %v265_v9, 0.0  ;;  %v388_v25 = vadd.f32 %v387_v40, %v386_v24  ;;  %v1200_v40 = vld [vmem:[#allocation2 + $0x20] sm:$0xff] }
  0xc9   :  { %v236_v12 = vadd.f32 %v235_v7, %v234_v62  ;;  %v167_v28 = vsel %vm166_vm3, %v143_v63, 0.0  ;;  %v389_v3 = vsel %vm83_vm1, %v367_v31, 0.0  ;;  %v277_v32 = vrot.slane %v1113_v6, %v1139_v20 }
  0xca   :  { %v165_v23 = vadd.f32 %v164_v21, %v163_v15  ;;  %v294_v29 = vadd.f32 %v293_v27, %v292_v22  ;;  %v295_v34 = vsel %vm152_vm2, %v269_v16, 0.0  ;;  %v297_v36 = vsel %vm152_vm2, %v273_v26, 0.0 }
  0xcb   :  { %237 = vadd.xlane.f32.xlu1 %v236_v12  ;;  %v390_v37 = vadd.f32 %v389_v3, %v388_v25  ;;  %v299_v39 = vsel %vm166_vm3, %v277_v32, 0.0  ;;  %v644_v31 = vrot.slane %v1200_v40, %v1063_v5  ;;  %v637_v6 = vcombine.high %v1200_v40, %v1200_v40 }
  0xcc   :  { %v168_v30 = vadd.f32 %v167_v28, %v165_v23  ;;  %v296_v35 = vadd.f32 %v295_v34, %v294_v29  ;;  %v661_v2 = vrot.slane %v1210_v57, %v1063_v5  ;;  %v654_v13 = vcombine.high %v1210_v57, %v1210_v57 }
  0xcd   :  { %v652_v41 = vcombine.high %v644_v31, %v644_v31  ;;  %v651_v44 = vrot.slane %v637_v6, %v1063_v5  ;;  %v679_v45 = vsel %vm69_vm0, %v644_v31, 0.0 }
  0xce   :  { %169 = vadd.xlane.f32.xlu0 %v168_v30  ;;  %v298_v38 = vadd.f32 %v297_v36, %v296_v35  ;;  %v669_v17 = vcombine.high %v661_v2, %v661_v2  ;;  %v686_v21 = vsel %vm69_vm0, %v661_v2, 0.0  ;;  %v668_v29 = vrot.slane %v654_v13, %v1063_v5 }
  0xcf   :  { %v680_v48 = vsel %vm69_vm0, %v652_v41, 0.0  ;;  %v653_v53 = vcombine.high %v651_v44, %v651_v44  ;;  %v682_v55 = vsel %vm69_vm0, %v651_v44, 0.0 }
  0xd0   :  { %v300_v24 = vadd.f32 %v299_v39, %v298_v38  ;;  %v681_v50 = vadd.f32 %v680_v48, %v679_v45  ;;  %v688_v35 = vsel %vm69_vm0, %v669_v17, 0.0 }
  0xd1   :  { %v684_v4 = vsel %vm69_vm0, %v653_v53, 0.0 }
  0xd2   :  { %391 = vadd.xlane.f32.xlu0 %v390_v37  ;;  %301 = vadd.xlane.f32.xlu1 %v300_v24  ;;  %v683_v61 = vadd.f32 %v682_v55, %v681_v50 }
  0xd4   :  { %v685_v14 = vadd.f32 %v684_v4, %v683_v61 }
  0xd6   :  { %v687_v3 = vadd.f32 %v686_v21, %v685_v14 }
  0xd8   :  { %v689_v31 = vadd.f32 %v688_v35, %v687_v3 }
 0x154   :  { %v238_v42 = vpop.xlane.xlu1 %237 }
 0x155   :  { %v239_v43 = vrot.slane %v238_v42, 4 }
 0x157   :  { %v240_v49 = vadd.f32 %v239_v43, %v238_v42  ;;  %v170_v52 = vpop.xlane.xlu0 %169  ;;  %v690_v43 = vsel %vm69_vm0, %v668_v29, 0.0 }
 0x158   :  { %v171_v56 = vrot.slane %v170_v52, 4 }
 0x159   :  { %v241_v51 = vrot.slane %v240_v49, 2 }
 0x15a   :  { %v172_v59 = vadd.f32 %v171_v56, %v170_v52 }
 0x15b   :  { %v392_v62 = vpop.xlane.xlu0 %391  ;;  %v242_v1 = vadd.f32 %v241_v51, %v240_v49  ;;  %v302_v8 = vpop.xlane.xlu1 %301  ;;  %v670_v49 = vcombine.high %v668_v29, %v668_v29 }
 0x15c   :  { %v173_v7 = vrot.slane %v172_v59, 2  ;;  %v393_v9 = vmul.f32 0.001, %v392_v62  ;;  %v303_v10 = vrot.slane %v302_v8, 4 }
 0x15d   :  { %v243_v16 = vrot.slane %v242_v1, 1 }
 0x15e   :  { %v401_v12 = vrot.slane %v393_v9, %v1090_v47  ;;  %v174_v63 = vadd.f32 %v173_v7, %v172_v59  ;;  %v304_v15 = vadd.f32 %v303_v10, %v302_v8  ;;  %v691_v59 = vadd.f32 %v690_v43, %v689_v31 }
 0x15f   :  { %v244_v32 = vadd.f32 %v243_v16, %v242_v1  ;;  %v692_v9 = vsel %vm83_vm1, %v670_v49, 0.0 }
 0x160   :  { %v403_v22 = vsub.f32 %v1077_v33, %v401_v12  ;;  %v404_v23 = vsub.f32 %v1087_v46, %v401_v12  ;;  %v175_v26 = vrot.slane %v174_v63, 1  ;;  %v305_v27 = vrot.slane %v304_v15, 2 }
 0x162   :  { %v951_v25 = vrot.slane %v403_v22, 9  ;;  %v1221_v28 = vmul.f32 %v403_v22, %v403_v22  ;;  %v176_v30 = vadd.f32 %v175_v26, %v174_v63  ;;  %v306_v34 = vadd.f32 %v305_v27, %v304_v15 }
 0x163   :  { %v952_v36 = vrot.slane %v404_v23, 9  ;;  %v1225_v37 = vmul.f32 %v404_v23, %v404_v23 }
 0x164   :  { %v488_v33 = vrot.slane %v1221_v28, %v1097_v54  ;;  %v492_v46 = vrot.slane %v1221_v28, %v1100_v58  ;;  %v413_v38 = vmul.f32 %v951_v25, %v403_v22  ;;  %955 = vpush %v176_v30  ;;  %v307_v39 = vrot.slane %v306_v34, 1 }
 0x165   :  { %v496_v5 = vrot.slane %v1221_v28, %v1104_v60  ;;  %957 = vpush %v244_v32  ;;  %v500_v41 = vrot.slane %v1221_v28, %v1109_v0  ;;  %v414_v44 = vmul.f32 %v952_v36, %v404_v23  ;;  %v504_v45 = vrot.slane %v1225_v37, %v1097_v54 }
 0x166   :  { %v525_v24 = vsel %vm152_vm2, %v488_v33, 0.0  ;;  %v308_v6 = vadd.f32 %v307_v39, %v306_v34  ;;  %v526_v42 = vsel %vm152_vm2, %v492_v46, 0.0  ;;  %v420_v51 = vrot.slane %v413_v38, %v1097_v54 }
 0x167   :  { %v527_v48 = vadd.f32 %v526_v42, %v525_v24  ;;  %v528_v50 = vsel %vm152_vm2, %v496_v5, 0.0  ;;  %v424_v52 = vrot.slane %v413_v38, %v1100_v58  ;;  %v428_v53 = vrot.slane %v413_v38, %v1104_v60 }
 0x168   :  { %959 = vpush %v308_v6  ;;  %v508_v55 = vrot.slane %v1225_v37, %v1100_v58  ;;  %v530_v61 = vsel %vm152_vm2, %v500_v41, 0.0  ;;  %v432_v62 = vrot.slane %v413_v38, %v1109_v0  ;;  %v457_v1 = vsel %vm152_vm2, %v420_v51, 0.0 }
 0x169   :  { %v529_v56 = vadd.f32 %v528_v50, %v527_v48  ;;  %v458_v2 = vsel %vm152_vm2, %v424_v52, 0.0  ;;  %v512_v4 = vrot.slane %v1225_v37, %v1104_v60  ;;  %v516_v10 = vrot.slane %v1225_v37, %v1109_v0 }
 0x16a   :  { %v459_v8 = vadd.f32 %v458_v2, %v457_v1  ;;  %v532_v12 = vsel %vm152_vm2, %v504_v45, 0.0  ;;  %v436_v63 = vrot.slane %v414_v44, %v1097_v54  ;;  %v460_v13 = vsel %vm152_vm2, %v428_v53, 0.0 }
 0x16b   :  { %v531_v7 = vadd.f32 %v530_v61, %v529_v56  ;;  %v552_v16 = vrot.slane %v1221_v28, %v1122_v11  ;;  %v556_v17 = vrot.slane %v1221_v28, %v1133_v18  ;;  %v534_v21 = vsel %vm152_vm2, %v508_v55, 0.0 }
 0x16c   :  { %v461_v15 = vadd.f32 %v460_v13, %v459_v8  ;;  %v440_v22 = vrot.slane %v414_v44, %v1100_v58  ;;  %v462_v23 = vsel %vm152_vm2, %v432_v62, 0.0  ;;  %v560_v26 = vrot.slane %v1221_v28, %v1136_v19 }
 0x16d   :  { %v533_v14 = vadd.f32 %v532_v12, %v531_v7  ;;  %v536_v25 = vsel %vm152_vm2, %v512_v4, 0.0  ;;  %v444_v29 = vrot.slane %v414_v44, %v1104_v60  ;;  %v464_v30 = vsel %vm152_vm2, %v436_v63, 0.0 }
 0x16e   :  { %v463_v3 = vadd.f32 %v462_v23, %v461_v15  ;;  %v564_v32 = vrot.slane %v1221_v28, %v1139_v20  ;;  %v589_v34 = vsel %vm152_vm2, %v552_v16, 0.0  ;;  %v590_v35 = vsel %vm152_vm2, %v556_v17, 0.0 }
 0x16f   :  { %v535_v27 = vadd.f32 %v534_v21, %v533_v14  ;;  %v538_v33 = vsel %vm166_vm3, %v516_v10, 0.0  ;;  %v591_v38 = vadd.f32 %v590_v35, %v589_v34  ;;  %v448_v39 = vrot.slane %v414_v44, %v1109_v0 }
 0x170   :  { %v465_v46 = vadd.f32 %v464_v30, %v463_v3  ;;  %v466_v5 = vsel %vm152_vm2, %v440_v22, 0.0  ;;  %v568_v24 = vrot.slane %v1225_v37, %v1122_v11  ;;  %v592_v31 = vsel %vm152_vm2, %v560_v26, 0.0 }
 0x171   :  { %v537_v36 = vadd.f32 %v536_v25, %v535_v27  ;;  %v593_v41 = vadd.f32 %v592_v31, %v591_v38  ;;  %v468_v42 = vsel %vm152_vm2, %v444_v29, 0.0  ;;  %v572_v43 = vrot.slane %v1225_v37, %v1133_v18 }
 0x172   :  { %v467_v28 = vadd.f32 %v466_v5, %v465_v46  ;;  %v594_v45 = vsel %vm152_vm2, %v564_v32, 0.0  ;;  %v693_v44 = vadd.f32 %v692_v9, %v691_v59  ;;  %v470_v50 = vsel %vm166_vm3, %v448_v39, 0.0 }
 0x173   :  { %v539_v6 = vadd.f32 %v538_v33, %v537_v36  ;;  %v595_v49 = vadd.f32 %v594_v45, %v593_v41  ;;  %v576_v51 = vrot.slane %v1225_v37, %v1136_v19  ;;  %v596_v52 = vsel %vm152_vm2, %v568_v24, 0.0 }
 0x174   :  { %v469_v48 = vadd.f32 %v468_v42, %v467_v28  ;;  %v580_v56 = vrot.slane %v1225_v37, %v1139_v20  ;;  %v598_v61 = vsel %vm152_vm2, %v572_v43, 0.0 }
 0x175   :  { %540 = vadd.xlane.f32.xlu0 %v539_v6  ;;  %v597_v55 = vadd.f32 %v596_v52, %v595_v49  ;;  %v600_v59 = vsel %vm152_vm2, %v576_v51, 0.0 }
 0x176   :  { %v471_v53 = vadd.f32 %v470_v50, %v469_v48  ;;  %v602_v2 = vsel %vm166_vm3, %v580_v56, 0.0 }
 0x177   :  { %v599_v62 = vadd.f32 %v598_v61, %v597_v55 }
 0x178   :  { %472 = vadd.xlane.f32.xlu1 %v471_v53 }
 0x179   :  { %694 = vadd.xlane.f32.xlu0 %v693_v44  ;;  %v601_v1 = vadd.f32 %v600_v59, %v599_v62 }
 0x17b   :  { %v603_v4 = vadd.f32 %v602_v2, %v601_v1 }
 0x17d   :  { %604 = vadd.xlane.f32.xlu1 %v603_v4 }
 0x195   :  { %s1293_s0 = spop %955 }
 0x196   :  { %s958_s13 = spop %957 }
 0x199   :  { %s960_s14 = spop %959 }
 0x19a   :  { %s310_s15 = smul.f32 %s960_s14, %s958_s13 }
 0x19c   :  { %v311_v7 = vstv %s310_s15 }
 0x19d   :  { %997 = vrsqrt.f32 %v311_v7  ;;  %vm314_vm4 = vcmp.eq.f32.partialorder %v311_v7, inf  ;;  %v317_v9 = vand.u32 2147483648, %v311_v7  ;;  %vm316_vm5 = vcmp.eq.f32.partialorder %v311_v7, 0.0 }
 0x1aa   :  { %v998_v37 = vpop.eup %997 }
 0x1ab   :  { %v313_v8 = vmul.f32 %v998_v37, %v311_v7 }
 0x1ad   :  { %v315_v10 = vsel %vm314_vm4, %v311_v7, %v313_v8 }
 0x1ae   :  { %v318_v12 = vsel %vm316_vm5, %v317_v9, %v315_v10 }
 0x1af   :  { %961 = vpush %v318_v12 }
 0x1e0   :  { %s962_s16 = spop %961 }
 0x1e1   :  { %v320_v63 = vstv %s962_s16 }
 0x1e2   :  { %999 = vrcp.f32 %v320_v63 }
 0x1ef   :  { %v1000_v13 = vpop.eup %999 }
 0x1f0   :  { %963 = vpush %v1000_v13 }
 0x1fe   :  { %v541_v14 = vpop.xlane.xlu0 %540 }
 0x1ff   :  { %v542_v15 = vrot.slane %v541_v14, 4 }
 0x201   :  { %v543_v16 = vadd.f32 %v542_v15, %v541_v14  ;;  %v473_v17 = vpop.xlane.xlu1 %472 }
 0x202   :  { %v695_v21 = vpop.xlane.xlu0 %694  ;;  %v474_v23 = vrot.slane %v473_v17, 4 }
 0x203   :  { %v544_v22 = vrot.slane %v543_v16, 2  ;;  %v696_v26 = vmul.f32 0.001, %v695_v21 }
 0x204   :  { %v475_v27 = vadd.f32 %v474_v23, %v473_v17 }
 0x205   :  { %v704_v25 = vrot.slane %v696_v26, %v1090_v47  ;;  %v545_v30 = vadd.f32 %v544_v22, %v543_v16 }
 0x206   :  { %v476_v29 = vrot.slane %v475_v27, 2  ;;  %v605_v34 = vpop.xlane.xlu1 %604 }
 0x207   :  { %v706_v3 = vsub.f32 %v1200_v40, %v704_v25  ;;  %v707_v32 = vsub.f32 %v1210_v57, %v704_v25  ;;  %v606_v33 = vrot.slane %v605_v34, 4  ;;  %v546_v38 = vrot.slane %v545_v30, 1 }
 0x208   :  { %v477_v46 = vadd.f32 %v476_v29, %v475_v27 }
 0x209   :  { %v953_v35 = vrot.slane %v706_v3, 9  ;;  %v1298_v36 = vmul.f32 %v706_v3, %v706_v3  ;;  %v1304_v47 = vmul.f32 %v707_v32, %v707_v32  ;;  %v607_v24 = vadd.f32 %v606_v33, %v605_v34 }
 0x20a   :  { %v478_v40 = vrot.slane %v477_v46, 1  ;;  %v954_v31 = vrot.slane %v707_v32, 9  ;;  %v547_v48 = vadd.f32 %v546_v38, %v545_v30 }
 0x20b   :  { %v791_v39 = vrot.slane %v1298_v36, %v1097_v54  ;;  %v795_v5 = vrot.slane %v1298_v36, %v1100_v58  ;;  %v799_v57 = vrot.slane %v1298_v36, %v1104_v60  ;;  %v716_v6 = vmul.f32 %v953_v35, %v706_v3 }
 0x20c   :  { %v803_v28 = vrot.slane %v1298_v36, %v1109_v0  ;;  %v608_v41 = vrot.slane %v607_v24, 2  ;;  %v479_v42 = vadd.f32 %v478_v40, %v477_v46  ;;  %v807_v50 = vrot.slane %v1304_v47, %v1097_v54 }
 0x20d   :  { %v828_v43 = vsel %vm152_vm2, %v791_v39, 0.0  ;;  %v829_v45 = vsel %vm152_vm2, %v795_v5, 0.0  ;;  %v831_v51 = vsel %vm152_vm2, %v799_v57, 0.0  ;;  %v811_v52 = vrot.slane %v1304_v47, %v1100_v58 }
 0x20e   :  { %v830_v44 = vadd.f32 %v829_v45, %v828_v43  ;;  %965 = vpush %v479_v42  ;;  %v609_v49 = vadd.f32 %v608_v41, %v607_v24  ;;  %v723_v55 = vrot.slane %v716_v6, %v1097_v54  ;;  %v727_v56 = vrot.slane %v716_v6, %v1100_v58 }
 0x20f   :  { %967 = vpush %v547_v48  ;;  %v717_v61 = vmul.f32 %v954_v31, %v707_v32  ;;  %v833_v59 = vsel %vm152_vm2, %v803_v28, 0.0  ;;  %v731_v1 = vrot.slane %v716_v6, %v1104_v60  ;;  %v815_v2 = vrot.slane %v1304_v47, %v1104_v60 }
 0x210   :  { %v832_v53 = vadd.f32 %v831_v51, %v830_v44  ;;  %v610_v62 = vrot.slane %v609_v49, 1  ;;  %v760_v7 = vsel %vm152_vm2, %v723_v55, 0.0  ;;  %v835_v8 = vsel %vm152_vm2, %v807_v50, 0.0 }
 0x211   :  { %v735_v9 = vrot.slane %v716_v6, %v1109_v0  ;;  %v761_v10 = vsel %vm152_vm2, %v727_v56, 0.0  ;;  %v819_v12 = vrot.slane %v1304_v47, %v1109_v0  ;;  %v837_v13 = vsel %vm152_vm2, %v811_v52, 0.0 }
 0x212   :  { %v834_v4 = vadd.f32 %v833_v59, %v832_v53  ;;  %v611_v37 = vadd.f32 %v610_v62, %v609_v49  ;;  %v762_v14 = vadd.f32 %v761_v10, %v760_v7  ;;  %v739_v15 = vrot.slane %v717_v61, %v1097_v54 }
 0x213   :  { %v763_v16 = vsel %vm152_vm2, %v731_v1, 0.0  ;;  %v855_v17 = vrot.slane %v1298_v36, %v1122_v11  ;;  %v859_v21 = vrot.slane %v1298_v36, %v1133_v18  ;;  %v863_v26 = vrot.slane %v1298_v36, %v1136_v19 }
 0x214   :  { %v836_v63 = vadd.f32 %v835_v8, %v834_v4  ;;  %969 = vpush %v611_v37  ;;  %v764_v23 = vadd.f32 %v763_v16, %v762_v14  ;;  %v839_v27 = vsel %vm152_vm2, %v815_v2, 0.0  ;;  %v743_v25 = vrot.slane %v717_v61, %v1100_v58 }
 0x215   :  { %v765_v29 = vsel %vm152_vm2, %v735_v9, 0.0  ;;  %v867_v54 = vrot.slane %v1298_v36, %v1139_v20  ;;  %v892_v32 = vsel %vm152_vm2, %v855_v17, 0.0  ;;  %v893_v34 = vsel %vm152_vm2, %v859_v21, 0.0 }
 0x216   :  { %v838_v22 = vadd.f32 %v837_v13, %v836_v63  ;;  %v766_v30 = vadd.f32 %v765_v29, %v764_v23  ;;  %v841_v35 = vsel %vm166_vm3, %v819_v12, 0.0  ;;  %v747_v33 = vrot.slane %v717_v61, %v1104_v60 }
 0x217   :  { %v767_v46 = vsel %vm152_vm2, %v739_v15, 0.0  ;;  %v894_v38 = vadd.f32 %v893_v34, %v892_v32  ;;  %v871_v5 = vrot.slane %v1304_v47, %v1122_v11  ;;  %v895_v36 = vsel %vm152_vm2, %v863_v26, 0.0 }
 0x218   :  { %v840_v3 = vadd.f32 %v839_v27, %v838_v22  ;;  %v768_v58 = vadd.f32 %v767_v46, %v766_v30  ;;  %v751_v24 = vrot.slane %v717_v61, %v1109_v0  ;;  %v769_v40 = vsel %vm152_vm2, %v743_v25, 0.0 }
 0x219   :  { %v896_v57 = vadd.f32 %v895_v36, %v894_v38  ;;  %v875_v60 = vrot.slane %v1304_v47, %v1133_v18  ;;  %v897_v6 = vsel %vm152_vm2, %v867_v54, 0.0  ;;  %v771_v28 = vsel %vm152_vm2, %v747_v33, 0.0 }
 0x21a   :  { %v842_v39 = vadd.f32 %v841_v35, %v840_v3  ;;  %v770_v31 = vadd.f32 %v769_v40, %v768_v58  ;;  %v879_v11 = vrot.slane %v1304_v47, %v1136_v19  ;;  %v899_v0 = vsel %vm152_vm2, %v871_v5, 0.0 }
 0x21b   :  { %v898_v41 = vadd.f32 %v897_v6, %v896_v57  ;;  %v773_v43 = vsel %vm166_vm3, %v751_v24, 0.0  ;;  %v883_v44 = vrot.slane %v1304_v47, %v1139_v20  ;;  %v901_v18 = vsel %vm152_vm2, %v875_v60, 0.0 }
 0x21c   :  { %843 = vadd.xlane.f32.xlu0 %v842_v39  ;;  %v772_v42 = vadd.f32 %v771_v28, %v770_v31  ;;  %v903_v50 = vsel %vm152_vm2, %v879_v11, 0.0 }
 0x21d   :  { %v900_v45 = vadd.f32 %v899_v0, %v898_v41  ;;  %v905_v19 = vsel %vm166_vm3, %v883_v44, 0.0 }
 0x21e   :  { %v774_v48 = vadd.f32 %v773_v43, %v772_v42 }
 0x21f   :  { %v902_v49 = vadd.f32 %v901_v18, %v900_v45 }
 0x220   :  { %775 = vadd.xlane.f32.xlu1 %v774_v48 }
 0x221   :  { %s964_s17 = spop %963  ;;  %v904_v51 = vadd.f32 %v903_v50, %v902_v49 }
 0x222   :  { %s323_s18 = smul.f32 %s964_s17, %s1293_s0 }
 0x223   :  { %v906_v52 = vadd.f32 %v905_v19, %v904_v51 }
 0x224   :  { %s324_s19 = sand.u32 2147483647, %s323_s18 }
 0x225   :  { %p325_p5 = scmp.lt.f32.partialorder %s324_s19, 0.001  ;;  %907 = vadd.xlane.f32.xlu1 %v906_v52 }
 0x227   :  { %s326_s20 = scalar_select %p325_p5, 1, 2 }
 0x229   :  { %328 = sst [smem:[#allocation5]] %s326_s20 }
 0x23f   :  { %s1367_s21 = spop %965 }
 0x240   :  { %s968_s22 = spop %967 }
 0x245   :  { %s970_s23 = spop %969 }
 0x246   :  { %s613_s24 = smul.f32 %s970_s23, %s968_s22 }
 0x248   :  { %v614_v20 = vstv %s613_s24 }
 0x249   :  { %1001 = vrsqrt.f32 %v614_v20  ;;  %vm617_vm6 = vcmp.eq.f32.partialorder %v614_v20, inf  ;;  %v620_v55 = vand.u32 2147483648, %v614_v20  ;;  %vm619_vm7 = vcmp.eq.f32.partialorder %v614_v20, 0.0 }
 0x256   :  { %v1002_v47 = vpop.eup %1001 }
 0x257   :  { %v616_v53 = vmul.f32 %v1002_v47, %v614_v20 }
 0x259   :  { %v618_v56 = vsel %vm617_vm6, %v614_v20, %v616_v53 }
 0x25a   :  { %v621_v61 = vsel %vm619_vm7, %v620_v55, %v618_v56 }
 0x25b   :  { %971 = vpush %v621_v61 }
 0x28c   :  { %s972_s25 = spop %971 }
 0x28d   :  { %v623_v62 = vstv %s972_s25 }
 0x28e   :  { %1003 = vrcp.f32 %v623_v62 }
 0x29b   :  { %v1004_v59 = vpop.eup %1003 }
 0x29c   :  { %973 = vpush %v1004_v59 }
 0x2a5   :  { %v844_v1 = vpop.xlane.xlu0 %843 }
 0x2a6   :  { %v845_v2 = vrot.slane %v844_v1, 4 }
 0x2a8   :  { %v846_v4 = vadd.f32 %v845_v2, %v844_v1 }
 0x2a9   :  { %v776_v37 = vpop.xlane.xlu1 %775 }
 0x2aa   :  { %v847_v7 = vrot.slane %v846_v4, 2  ;;  %v777_v8 = vrot.slane %v776_v37, 4 }
 0x2ac   :  { %v778_v9 = vadd.f32 %v777_v8, %v776_v37  ;;  %v848_v10 = vadd.f32 %v847_v7, %v846_v4 }
 0x2ae   :  { %v779_v12 = vrot.slane %v778_v9, 2  ;;  %v908_v63 = vpop.xlane.xlu1 %907  ;;  %v849_v16 = vrot.slane %v848_v10, 1 }
 0x2af   :  { %v909_v13 = vrot.slane %v908_v63, 4 }
 0x2b0   :  { %v780_v14 = vadd.f32 %v779_v12, %v778_v9  ;;  %v850_v26 = vadd.f32 %v849_v16, %v848_v10 }
 0x2b1   :  { %v910_v15 = vadd.f32 %v909_v13, %v908_v63 }
 0x2b2   :  { %v781_v17 = vrot.slane %v780_v14, 1 }
 0x2b3   :  { %v911_v21 = vrot.slane %v910_v15, 2 }
 0x2b4   :  { %v782_v22 = vadd.f32 %v781_v17, %v780_v14 }
 0x2b5   :  { %v912_v23 = vadd.f32 %v911_v21, %v910_v15 }
 0x2b6   :  { %975 = vpush %v782_v22 }
 0x2b7   :  { %977 = vpush %v850_v26  ;;  %v913_v27 = vrot.slane %v912_v23, 1 }
 0x2b9   :  { %v914_v25 = vadd.f32 %v913_v27, %v912_v23 }
 0x2bb   :  { %979 = vpush %v914_v25 }
 0x2cd   :  { %s974_s26 = spop %973 }
 0x2ce   :  { %s626_s27 = smul.f32 %s974_s26, %s1367_s21 }
 0x2d0   :  { %s627_s28 = sand.u32 2147483647, %s626_s27 }
 0x2d1   :  { %p628_p6 = scmp.lt.f32.partialorder %s627_s28, 0.001 }
 0x2d3   :  { %s629_s29 = scalar_select %p628_p6, 1, 2 }
 0x2d5   :  { %631 = sst [smem:[#allocation5 + $0x1]] %s629_s29 }
 0x2e7   :  { %s976_s30 = spop %975 }
 0x2e8   :  { %s978_s2 = spop %977 }
 0x2ec   :  { %s980_s3 = spop %979 }
 0x2ed   :  { %s916_s4 = smul.f32 %s980_s3, %s978_s2 }
 0x2ef   :  { %v917_v29 = vstv %s916_s4 }
 0x2f0   :  { %1005 = vrsqrt.f32 %v917_v29  ;;  %vm920_vm8 = vcmp.eq.f32.partialorder %v917_v29, inf  ;;  %v923_v30 = vand.u32 2147483648, %v917_v29  ;;  %vm922_vm9 = vcmp.eq.f32.partialorder %v917_v29, 0.0 }
 0x2fd   :  { %v1006_v54 = vpop.eup %1005 }
 0x2fe   :  { %v919_v3 = vmul.f32 %v1006_v54, %v917_v29 }
 0x300   :  { %v921_v32 = vsel %vm920_vm8, %v917_v29, %v919_v3 }
 0x301   :  { %v924_v34 = vsel %vm922_vm9, %v923_v30, %v921_v32 }
 0x302   :  { %981 = vpush %v924_v34 }
 0x333   :  { %s982_s5 = spop %981 }
 0x334   :  { %v926_v35 = vstv %s982_s5 }
 0x335   :  { %1007 = vrcp.f32 %v926_v35 }
 0x342   :  { %v1008_v33 = vpop.eup %1007 }
 0x343   :  { %983 = vpush %v1008_v33 }
 0x374   :  { %s984_s6 = spop %983 }
 0x375   :  { %s929_s7 = smul.f32 %s984_s6, %s976_s30 }
 0x377   :  { %s930_s8 = sand.u32 2147483647, %s929_s7 }
 0x378   :  { %p931_p7 = scmp.lt.f32.partialorder %s930_s8, 0.001 }
 0x37a   :  { %s932_s9 = scalar_select %p931_p7, 1, 2 }
 0x37c   :  { %934 = sst [smem:[#allocation5 + $0x2]] %s932_s9 }
 0x37d   :  { %942 = dma.smem_to_hbm %s1046_s10, 16, %s1374_s1, [#allocation4]  }
 0x37e   :  { %1039 = dma.done.wait [#allocation4], 16  }
 0x37f   :  { %1040 = vsyncadd [#allocation4], 4294967280 }
 0x380   :  { %946 = sfence }
 0x381   :  { %947 = vsyncpa [#allocation3], 1 }
 0x382   :  { %948 = vsyncpa [#allocation4], 1 }

</bundles_post_ra>
